<compile_context>
chip_gen: v5e
topology: v5e:2x2
jax: 0.10.0
libtpu: 0.0.40
codegen_flags: <defaults>
</compile_context>

<pallas_src>
import functools

import jax
import jax.numpy as jnp
from jax.experimental import pallas as pl
from jax.experimental.pallas import tpu as pltpu

LANE = 128      # TPU lane width (last-dim tiling quantum)
SUBLANE = 8     # f32 sublane quantum


def _round_up(x, m):
    return ((x + m - 1) // m) * m


# ---------------------------------------------------------------------------
# Kernel.  grid = (batch tiles, patch chunks); patch-chunk axis is a reduction.
# ---------------------------------------------------------------------------
def image_classifier_kernel(patches_ref, wp_ref, bp_ref, gamma_ref, beta_ref,
                            w_head_ref, b_cls_ref, out_ref, acc_ref, *,
                            num_patches):
    """Per-step shapes (TB = images per batch tile, PC = patches per chunk):
       patches_ref : (TB, PC, Dp) bf16   patch pixels (Dp zero-padded to 128k)
       wp_ref      : (Dp, H)      bf16   patch-embedding weight
       bp_ref      : (1, H)       f32    patch-embedding bias
       gamma/beta  : (1, H)       f32    LayerNorm affine
       w_head_ref  : (H, C)       bf16   fused (w_proj @ classifier.weight.T)
       b_cls_ref   : (1, C)       f32    classifier bias (C zero-padded)
       out_ref     : (TB, C)      f32    logits
       acc_ref     : (TB, H)      f32    pooled-sum accumulator (scratch)
    """
    j = pl.program_id(1)
    tb, pc, dp = patches_ref.shape
    hidden = wp_ref.shape[1]

    @pl.when(j == 0)
    def _init():
        acc_ref[...] = jnp.zeros_like(acc_ref)

    # Patch-embedding GEMM on the MXU: bf16 operands, f32 accumulation.
    # M = TB*PC rows: keep TB large (128+) at real scale so rows fill the MXU.
    x = jnp.dot(patches_ref[...].reshape(tb * pc, dp), wp_ref[...],
                preferred_element_type=jnp.float32)              # (TB*PC, H) f32
    x = x + bp_ref[...]                                          # f32 bias
    # TODO(synk): torch.nn.GELU defaults to exact erf; the tanh approximation
    # is used here (kernel and the JAX reference below agree with each other).
    x = jax.nn.gelu(x)
    # NOTE: on v6e/v7x the post-GELU chunk could be kept bf16 (bf16 VPU) while
    # the accumulator stays f32; kept f32 here so the same kernel is v5e-safe.

    # Accumulate per-image patch sums for this chunk (VPU/XLU only, no MXU).
    acc_ref[...] += jnp.sum(x.reshape(tb, pc, hidden), axis=1)

    @pl.when(j == pl.num_programs(1) - 1)
    def _finalize():
        pooled = acc_ref[...] * (1.0 / num_patches)              # mean pool
        # LayerNorm over the hidden dim, statistics in f32.
        mu = jnp.mean(pooled, axis=-1, keepdims=True)
        var = jnp.mean((pooled - mu) ** 2, axis=-1, keepdims=True)
        normed = (pooled - mu) * jax.lax.rsqrt(var + 1e-5)
        normed = normed * gamma_ref[...] + beta_ref[...]
        # Fused visual-projection + classifier head: one (TB,H)@(H,C) MXU pass.
        logits = jnp.dot(normed.astype(w_head_ref.dtype), w_head_ref[...],
                         preferred_element_type=jnp.float32)
        out_ref[...] = (logits + b_cls_ref[...]).astype(out_ref.dtype)


# ---------------------------------------------------------------------------
# Glue: patchify (layout only), one-time weight prep, pallas_call wrapper.
# ---------------------------------------------------------------------------
def patchify_nchw(x, patch):
    """NCHW -> [B, P, C*ph*pw] flattened patches (pure layout, no compute)."""
    B, C, H, W = x.shape
    ph = pw = patch
    x = x.reshape(B, C, H // ph, ph, W // pw, pw)
    x = jnp.transpose(x, (0, 2, 4, 1, 3, 5))          # B, Hp, Wp, C, ph, pw
    return x.reshape(B, (H // ph) * (W // pw), C * ph * pw)


def fold_head(w_proj, w_cls):
    """W_head[H, C] = w_proj @ w_cls.T, contracted on dim 1 of w_cls so no
    transposed copy of the classifier weight is ever materialized."""
    return jax.lax.dot_general(
        w_proj, w_cls, dimension_numbers=(((1,), (1,)), ((), ())),
        preferred_element_type=jnp.float32)


def prepare_params(params):
    """One-time (per checkpoint) weight prep, hoisted out of the forward path:
    fuse visual projection into the classifier head, cast MXU operands to bf16,
    zero-pad the patch-feature (K) and class (N) dims to lane multiples."""
    dp, hidden = params["w_patch"].shape
    num_classes = params["w_cls"].shape[0]
    dp_pad = _round_up(dp, LANE)
    c_pad = _round_up(num_classes, LANE)
    assert hidden % LANE == 0, "hidden dim must be a multiple of 128"

    w_patch = jnp.pad(params["w_patch"], ((0, dp_pad - dp), (0, 0)))
    w_head = fold_head(params["w_proj"], params["w_cls"])
    w_head = jnp.pad(w_head, ((0, 0), (0, c_pad - num_classes)))
    b_cls = jnp.pad(params["b_cls"], ((0, 0), (0, c_pad - num_classes)))

    return {
        "w_patch": w_patch.astype(jnp.bfloat16),    # (Dp_pad, H) bf16
        "b_patch": params["b_patch"],               # (1, H) f32
        "ln_gamma": params["ln_gamma"],             # (1, H) f32
        "ln_beta": params["ln_beta"],               # (1, H) f32
        "w_head": w_head.astype(jnp.bfloat16),      # (H, C_pad) bf16
        "b_cls": b_cls,                             # (1, C_pad) f32
        "dp": dp, "dp_pad": dp_pad,
        "num_classes": num_classes, "c_pad": c_pad,
        "hidden": hidden,
    }


def image_classifier_forward(x_nchw, prep, *, patch=4, batch_tile=128,
                             patch_chunk=32):
    B = x_nchw.shape[0]
    dp, dp_pad = prep["dp"], prep["dp_pad"]
    hidden, c_pad = prep["hidden"], prep["c_pad"]
    num_classes = prep["num_classes"]

    patches = patchify_nchw(x_nchw, patch)                  # (B, P, Dp)
    P = patches.shape[1]
    # Pad K to a lane multiple: full 128-lane DMA + full-width MXU K pass.
    patches = jnp.pad(patches, ((0, 0), (0, 0), (0, dp_pad - dp)))
    patches = patches.astype(jnp.bfloat16)

    # --- Tile selection -----------------------------------------------------
    # Batch tile: as large as the batch allows (128+ at real scale so both
    # GEMMs have M >= 128 and the ~0.35us/step grid overhead is amortized).
    # On v7x pick batch_tile <= B/2 so the "parallel" axis spans both
    # TensorCores; on v5e (1 TC) fewer, fatter steps are strictly better.
    tb = B if B <= batch_tile else batch_tile
    b_pad = _round_up(B, tb)
    if b_pad != B:                                           # ragged tail
        patches = jnp.pad(patches, ((0, b_pad - B), (0, 0), (0, 0)))
    # Patch chunk: bounds the live f32 post-GELU intermediate to one chunk so
    # the batch tile, not the full (tb*P, H) activation, sets the VMEM budget.
    # Chunk must be a sublane multiple (or the full patch count).
    divs = [d for d in range(SUBLANE, patch_chunk + 1, SUBLANE) if P % d == 0]
    pc = max(divs) if divs else P

    grid = (b_pad // tb, P // pc)

    # Scoped-VMEM budget: double-buffered patch tile + single-buffered weights
    # + f32 chunk activation + pooled accumulator + output, with headroom.
    est = (2 * tb * pc * dp_pad * 2
           + (dp_pad * hidden + hidden * c_pad) * 2
           + (4 * hidden + 2 * c_pad) * 4
           + 2 * tb * c_pad * 4
           + tb * hidden * 4
           + 2 * tb * pc * hidden * 4)
    vmem_limit = int(min(max(2 * est, 32 * 2**20), 64 * 2**20))

    def invariant(shape):
        # Grid-invariant operand: single-buffered (no second VMEM copy).
        return pl.BlockSpec(shape, lambda i, j: (0,) * len(shape),
                            pipeline_mode=pl.Buffered(1))

    kernel = functools.partial(image_classifier_kernel, num_patches=P)

    out = pl.pallas_call(
        kernel,
        out_shape=jax.ShapeDtypeStruct((b_pad, c_pad), jnp.float32),
        grid=grid,
        in_specs=[
            pl.BlockSpec((tb, pc, dp_pad), lambda i, j: (i, j, 0)),  # patch tile
            invariant((dp_pad, hidden)),                             # patch-embed W
            invariant((1, hidden)),                                  # patch-embed b
            invariant((1, hidden)),                                  # LN gamma
            invariant((1, hidden)),                                  # LN beta
            invariant((hidden, c_pad)),                              # fused head W
            invariant((1, c_pad)),                                   # classifier b
        ],
        out_specs=pl.BlockSpec((tb, c_pad), lambda i, j: (i, 0)),
        scratch_shapes=[pltpu.VMEM((tb, hidden), jnp.float32)],
        compiler_params=pltpu.CompilerParams(
            dimension_semantics=("parallel", "arbitrary"),
            vmem_limit_bytes=vmem_limit),
    )(patches, prep["w_patch"], prep["b_patch"], prep["ln_gamma"],
      prep["ln_beta"], prep["w_head"], prep["b_cls"])

    return out[:B, :num_classes]


# ---------------------------------------------------------------------------
# Pure-JAX reference mirroring the kernel's math (same bf16 matmul operands,
# f32 accumulation / elementwise) for a tight correctness check.
# ---------------------------------------------------------------------------
def reference_forward(x_nchw, params, *, patch=4):
    patches = patchify_nchw(x_nchw, patch)                        # [B, P, Dp]
    B, P, _ = patches.shape
    p2d = patches.reshape(B * P, -1).astype(jnp.bfloat16)
    w_patch = params["w_patch"].astype(jnp.bfloat16)

    x = jnp.dot(p2d, w_patch, preferred_element_type=jnp.float32)
    x = x + params["b_patch"]
    x = jax.nn.gelu(x)
    pooled = jnp.mean(x.reshape(B, P, -1), axis=1)

    mu = jnp.mean(pooled, axis=-1, keepdims=True)
    var = jnp.mean((pooled - mu) ** 2, axis=-1, keepdims=True)
    normed = (pooled - mu) * jax.lax.rsqrt(var + 1e-5)
    normed = normed * params["ln_gamma"] + params["ln_beta"]

    w_head = fold_head(params["w_proj"], params["w_cls"]).astype(jnp.bfloat16)
    logits = jnp.dot(normed.astype(jnp.bfloat16), w_head,
                     preferred_element_type=jnp.float32)
    return logits + params["b_cls"]


def init_params(key, d_patch, hidden, output_dim, num_classes):
    k1, k2, k3, k4 = jax.random.split(key, 4)
    return {
        "w_patch": jax.random.normal(k1, (d_patch, hidden), jnp.float32) * 0.02,
        "b_patch": jnp.zeros((1, hidden), jnp.float32),
        "ln_gamma": jnp.ones((1, hidden), jnp.float32),
        "ln_beta": jnp.zeros((1, hidden), jnp.float32),
        "w_proj": jax.random.normal(k2, (hidden, output_dim), jnp.float32) * 0.02,
        # torch.nn.Linear weight layout: [num_classes, output_dim]
        "w_cls": jax.random.normal(k3, (num_classes, output_dim), jnp.float32) * 0.02,
        "b_cls": jax.random.normal(k4, (1, num_classes), jnp.float32) * 0.01,
    }


if __name__ == "__main__":
    # Small shapes: batch=2, channels=4, spatial=16, patch=4 -> 16 patches of
    # dim 64 (zero-padded to 128).  num_classes=1000 (module default), padded
    # to 1024 inside the wrapper for lane-dense output stores.
    B, CH, HH, WW = 2, 4, 16, 16
    PATCH = 4
    HIDDEN = 128
    OUTPUT_DIM = 128          # image_encoder.output_dim
    NUM_CLASSES = 1000

    key = jax.random.PRNGKey(0)
    kx, kp = jax.random.split(key)
    x = jax.random.normal(kx, (B, CH, HH, WW), jnp.float32)
    params = init_params(kp, CH * PATCH * PATCH, HIDDEN, OUTPUT_DIM, NUM_CLASSES)

    # One-time weight prep (head fold, bf16 casts, padding) -- hoisted out of
    # the per-call forward path.
    prep = prepare_params(params)

    # patch_chunk=8 -> two patch chunks, exercising the in-kernel reduction.
    out = image_classifier_forward(x, prep, patch=PATCH, patch_chunk=8)
    out = jax.block_until_ready(out)

    ref = reference_forward(x, params, patch=PATCH)
    assert out.shape == (B, NUM_CLASSES)
    assert jnp.allclose(out, ref, atol=2e-3, rtol=2e-3), "mismatch vs JAX reference"

    print("KERNEL_OK")
</pallas_src>

<mosaic_0001>
module attributes {stable_mosaic.version = 11 : i64} {
  func.func @image_classifier_kernel(%arg0: i32, %arg1: i32, %arg2: memref<2x8x128xbf16, #tpu.memory_space<vmem>>, %arg3: memref<128x128xbf16, #tpu.memory_space<vmem>>, %arg4: memref<1x128xf32, #tpu.memory_space<vmem>>, %arg5: memref<1x128xf32, #tpu.memory_space<vmem>>, %arg6: memref<1x128xf32, #tpu.memory_space<vmem>>, %arg7: memref<128x1024xbf16, #tpu.memory_space<vmem>>, %arg8: memref<1x1024xf32, #tpu.memory_space<vmem>>, %arg9: memref<2x1024xf32, #tpu.memory_space<vmem>>, %arg10: memref<2x128xf32, #tpu.memory_space<vmem>>) attributes {dimension_semantics = [#tpu.dimension_semantics<parallel>, #tpu.dimension_semantics<arbitrary>], iteration_bounds = array<i64: 1, 2>, scalar_prefetch = 0 : i64, scratch_operands = 1 : i64, tpu.core_type = #tpu.core_type<tc>, window_params = [{transform_indices = @transform_0, window_bounds = array<i64: 2, 8, 128>}, {pipeline_mode = #tpu.pipeline_mode<synchronous>, transform_indices = @transform_1, window_bounds = array<i64: 128, 128>}, {pipeline_mode = #tpu.pipeline_mode<synchronous>, transform_indices = @transform_2, window_bounds = array<i64: 1, 128>}, {pipeline_mode = #tpu.pipeline_mode<synchronous>, transform_indices = @transform_3, window_bounds = array<i64: 1, 128>}, {pipeline_mode = #tpu.pipeline_mode<synchronous>, transform_indices = @transform_4, window_bounds = array<i64: 1, 128>}, {pipeline_mode = #tpu.pipeline_mode<synchronous>, transform_indices = @transform_5, window_bounds = array<i64: 128, 1024>}, {pipeline_mode = #tpu.pipeline_mode<synchronous>, transform_indices = @transform_6, window_bounds = array<i64: 1, 1024>}, {transform_indices = @transform_7, window_bounds = array<i64: 2, 1024>}]} {
    %c0_i32 = arith.constant 0 : i32
    %0 = arith.cmpi eq, %arg1, %c0_i32 : i32
    %1 = arith.extui %0 : i1 to i32
    %c0_i32_0 = arith.constant 0 : i32
    %2 = arith.cmpi ne, %1, %c0_i32_0 : i32
    scf.if %2 {
      %cst_17 = arith.constant 0.000000e+00 : f32
      %31 = vector.broadcast %cst_17 : f32 to vector<2x128xf32>
      %c0_18 = arith.constant 0 : index
      %c0_19 = arith.constant 0 : index
      %32 = vector.load %arg10[%c0_18, %c0_19] : memref<2x128xf32, #tpu.memory_space<vmem>>, vector<2x128xf32>
      tpu.vector_store %arg10[%c0_18, %c0_19], %31 {strides = array<i32>} : memref<2x128xf32, #tpu.memory_space<vmem>>, vector<2x128xf32>,
    } else {
    }
    %c0 = arith.constant 0 : index
    %c0_1 = arith.constant 0 : index
    %c0_2 = arith.constant 0 : index
    %3 = vector.load %arg2[%c0, %c0_1, %c0_2] : memref<2x8x128xbf16, #tpu.memory_space<vmem>>, vector<2x8x128xbf16>
    %4 = vector.shape_cast %3 : vector<2x8x128xbf16> to vector<16x128xbf16>
    %c0_3 = arith.constant 0 : index
    %c0_4 = arith.constant 0 : index
    %5 = vector.load %arg3[%c0_3, %c0_4] : memref<128x128xbf16, #tpu.memory_space<vmem>>, vector<128x128xbf16>
    %cst = arith.constant dense<0.000000e+00> : vector<16x128xf32>
    %6 = tpu.matmul %4, %5, %cst {dimension_numbers = #tpu.dot_dimension_numbers<[1], [0], [0], [1], [0, 0, 1, 1], [], []>} : vector<16x128xbf16>, vector<128x128xbf16>, vector<16x128xf32> -> vector<16x128xf32>
    %c0_5 = arith.constant 0 : index
    %c0_6 = arith.constant 0 : index
    %7 = vector.load %arg4[%c0_5, %c0_6] : memref<1x128xf32, #tpu.memory_space<vmem>>, vector<1x128xf32>
    %8 = vector.broadcast %7 : vector<1x128xf32> to vector<16x128xf32>
    %9 = arith.addf %6, %8 : vector<16x128xf32>
    %10 = arith.mulf %9, %9 : vector<16x128xf32>
    %11 = arith.mulf %9, %10 : vector<16x128xf32>
    %cst_7 = arith.constant 4.471500e-02 : f32
    %12 = vector.broadcast %cst_7 : f32 to vector<16x128xf32>
    %13 = arith.mulf %12, %11 : vector<16x128xf32>
    %14 = arith.addf %9, %13 : vector<16x128xf32>
    %cst_8 = arith.constant 0.797884583 : f32
    %15 = vector.broadcast %cst_8 : f32 to vector<16x128xf32>
    %16 = arith.mulf %15, %14 : vector<16x128xf32>
    %17 = math.tanh %16 : vector<16x128xf32>
    %cst_9 = arith.constant 1.000000e+00 : f32
    %18 = vector.broadcast %cst_9 : f32 to vector<16x128xf32>
    %19 = arith.addf %18, %17 : vector<16x128xf32>
    %cst_10 = arith.constant 5.000000e-01 : f32
    %20 = vector.broadcast %cst_10 : f32 to vector<16x128xf32>
    %21 = arith.mulf %20, %19 : vector<16x128xf32>
    %22 = arith.mulf %9, %21 : vector<16x128xf32>
    %c0_11 = arith.constant 0 : index
    %c0_12 = arith.constant 0 : index
    %23 = vector.load %arg10[%c0_11, %c0_12] : memref<2x128xf32, #tpu.memory_space<vmem>>, vector<2x128xf32>
    %24 = vector.shape_cast %22 : vector<16x128xf32> to vector<2x8x128xf32>
    %cst_13 = arith.constant dense<0.000000e+00> : vector<2x128xf32>
    %25 = vector.multi_reduction <add>, %24, %cst_13 [1] : vector<2x8x128xf32> to vector<2x128xf32>
    %26 = arith.addf %23, %25 : vector<2x128xf32>
    %c0_14 = arith.constant 0 : index
    %c0_15 = arith.constant 0 : index
    %27 = vector.load %arg10[%c0_14, %c0_15] : memref<2x128xf32, #tpu.memory_space<vmem>>, vector<2x128xf32>
    tpu.vector_store %arg10[%c0_14, %c0_15], %26 {strides = array<i32>} : memref<2x128xf32, #tpu.memory_space<vmem>>, vector<2x128xf32>,
    %c1_i32 = arith.constant 1 : i32
    %28 = arith.cmpi eq, %arg1, %c1_i32 : i32
    %29 = arith.extui %28 : i1 to i32
    %c0_i32_16 = arith.constant 0 : i32
    %30 = arith.cmpi ne, %29, %c0_i32_16 : i32
    scf.if %30 {
      %c0_17 = arith.constant 0 : index
      %c0_18 = arith.constant 0 : index
      %31 = vector.load %arg10[%c0_17, %c0_18] : memref<2x128xf32, #tpu.memory_space<vmem>>, vector<2x128xf32>
      %cst_19 = arith.constant 6.250000e-02 : f32
      %32 = vector.broadcast %cst_19 : f32 to vector<2x128xf32>
      %33 = arith.mulf %31, %32 : vector<2x128xf32>
      %cst_20 = arith.constant dense<0.000000e+00> : vector<2xf32>
      %34 = vector.multi_reduction <add>, %33, %cst_20 [1] : vector<2x128xf32> to vector<2xf32>
      %35 = vector.shape_cast %34 : vector<2xf32> to vector<2x1xf32>
      %cst_21 = arith.constant 1.280000e+02 : f32
      %36 = vector.broadcast %cst_21 : f32 to vector<2x1xf32>
      %37 = arith.divf %35, %36 : vector<2x1xf32>
      %38 = vector.broadcast %37 : vector<2x1xf32> to vector<2x128xf32>
      %39 = arith.subf %33, %38 : vector<2x128xf32>
      %40 = arith.mulf %39, %39 : vector<2x128xf32>
      %cst_22 = arith.constant dense<0.000000e+00> : vector<2xf32>
      %41 = vector.multi_reduction <add>, %40, %cst_22 [1] : vector<2x128xf32> to vector<2xf32>
      %42 = vector.shape_cast %41 : vector<2xf32> to vector<2x1xf32>
      %cst_23 = arith.constant 1.280000e+02 : f32
      %43 = vector.broadcast %cst_23 : f32 to vector<2x1xf32>
      %44 = arith.divf %42, %43 : vector<2x1xf32>
      %45 = vector.broadcast %37 : vector<2x1xf32> to vector<2x128xf32>
      %46 = arith.subf %33, %45 : vector<2x128xf32>
      %cst_24 = arith.constant 9.99999974E-6 : f32
      %47 = vector.broadcast %cst_24 : f32 to vector<2x1xf32>
      %48 = arith.addf %44, %47 : vector<2x1xf32>
      %49 = math.rsqrt %48 : vector<2x1xf32>
      %50 = vector.broadcast %49 : vector<2x1xf32> to vector<2x128xf32>
      %51 = arith.mulf %46, %50 : vector<2x128xf32>
      %c0_25 = arith.constant 0 : index
      %c0_26 = arith.constant 0 : index
      %52 = vector.load %arg5[%c0_25, %c0_26] : memref<1x128xf32, #tpu.memory_space<vmem>>, vector<1x128xf32>
      %53 = vector.broadcast %52 : vector<1x128xf32> to vector<2x128xf32>
      %54 = arith.mulf %51, %53 : vector<2x128xf32>
      %c0_27 = arith.constant 0 : index
      %c0_28 = arith.constant 0 : index
      %55 = vector.load %arg6[%c0_27, %c0_28] : memref<1x128xf32, #tpu.memory_space<vmem>>, vector<1x128xf32>
      %56 = vector.broadcast %55 : vector<1x128xf32> to vector<2x128xf32>
      %57 = arith.addf %54, %56 : vector<2x128xf32>
      %58 = arith.truncf %57 : vector<2x128xf32> to vector<2x128xbf16>
      %c0_29 = arith.constant 0 : index
      %c0_30 = arith.constant 0 : index
      %59 = vector.load %arg7[%c0_29, %c0_30] : memref<128x1024xbf16, #tpu.memory_space<vmem>>, vector<128x1024xbf16>
      %cst_31 = arith.constant dense<0.000000e+00> : vector<2x1024xf32>
      %60 = tpu.matmul %58, %59, %cst_31 {dimension_numbers = #tpu.dot_dimension_numbers<[1], [0], [0], [1], [0, 0, 1, 1], [], []>} : vector<2x128xbf16>, vector<128x1024xbf16>, vector<2x1024xf32> -> vector<2x1024xf32>
      %c0_32 = arith.constant 0 : index
      %c0_33 = arith.constant 0 : index
      %61 = vector.load %arg8[%c0_32, %c0_33] : memref<1x1024xf32, #tpu.memory_space<vmem>>, vector<1x1024xf32>
      %62 = vector.broadcast %61 : vector<1x1024xf32> to vector<2x1024xf32>
      %63 = arith.addf %60, %62 : vector<2x1024xf32>
      %c0_34 = arith.constant 0 : index
      %c0_35 = arith.constant 0 : index
      %64 = vector.load %arg9[%c0_34, %c0_35] : memref<2x1024xf32, #tpu.memory_space<vmem>>, vector<2x1024xf32>
      tpu.vector_store %arg9[%c0_34, %c0_35], %63 {strides = array<i32>} : memref<2x1024xf32, #tpu.memory_space<vmem>>, vector<2x1024xf32>,
    } else {
    }
    return
  }
  func.func @transform_0(%arg0: i32, %arg1: i32) -> (i32, i32, i32) {
    %c0_i32 = arith.constant 0 : i32
    %c0_i32_0 = arith.constant 0 : i32
    return %arg0, %arg1, %c0_i32 : i32, i32, i32
  }
  func.func @transform_1(%arg0: i32, %arg1: i32) -> (i32, i32) {
    %c0_i32 = arith.constant 0 : i32
    %c0_i32_0 = arith.constant 0 : i32
    %c0_i32_1 = arith.constant 0 : i32
    return %c0_i32, %c0_i32_0 : i32, i32
  }
  func.func @transform_2(%arg0: i32, %arg1: i32) -> (i32, i32) {
    %c0_i32 = arith.constant 0 : i32
    %c0_i32_0 = arith.constant 0 : i32
    %c0_i32_1 = arith.constant 0 : i32
    return %c0_i32, %c0_i32_0 : i32, i32
  }
  func.func @transform_3(%arg0: i32, %arg1: i32) -> (i32, i32) {
    %c0_i32 = arith.constant 0 : i32
    %c0_i32_0 = arith.constant 0 : i32
    %c0_i32_1 = arith.constant 0 : i32
    return %c0_i32, %c0_i32_0 : i32, i32
  }
  func.func @transform_4(%arg0: i32, %arg1: i32) -> (i32, i32) {
    %c0_i32 = arith.constant 0 : i32
    %c0_i32_0 = arith.constant 0 : i32
    %c0_i32_1 = arith.constant 0 : i32
    return %c0_i32, %c0_i32_0 : i32, i32
  }
  func.func @transform_5(%arg0: i32, %arg1: i32) -> (i32, i32) {
    %c0_i32 = arith.constant 0 : i32
    %c0_i32_0 = arith.constant 0 : i32
    %c0_i32_1 = arith.constant 0 : i32
    return %c0_i32, %c0_i32_0 : i32, i32
  }
  func.func @transform_6(%arg0: i32, %arg1: i32) -> (i32, i32) {
    %c0_i32 = arith.constant 0 : i32
    %c0_i32_0 = arith.constant 0 : i32
    %c0_i32_1 = arith.constant 0 : i32
    return %c0_i32, %c0_i32_0 : i32, i32
  }
  func.func @transform_7(%arg0: i32, %arg1: i32) -> (i32, i32) {
    %c0_i32 = arith.constant 0 : i32
    %c0_i32_0 = arith.constant 0 : i32
    return %arg0, %c0_i32 : i32, i32
  }
}

</mosaic_0001>

<bundles_post_ra>
// kernel: tpu_custom_call.1
= control target key start
LH: loop header
LB: loop body
LE: loop exit
PB: predicated region body
PF: predicated region fallthrough
CT: control target
= control target key end

     0   :  { %s2110_s0 = inlined_call_operand.hbm [shape: bf16[2,16,128], index: 0, kind: input, shape index: {}]   ;;  %s2111_s1 = inlined_call_operand.hbm [shape: bf16[128,128], index: 1, kind: input, shape index: {}]   ;;  %s2112_s2 = inlined_call_operand.vmem [shape: f32[1,128], index: 2, kind: input, shape index: {}]   ;;  %s2113_s3 = inlined_call_operand.vmem [shape: f32[1,128], index: 3, kind: input, shape index: {}]   ;;  %s2114_s4 = inlined_call_operand.vmem [shape: f32[1,128], index: 4, kind: input, shape index: {}]   ;;  %s2115_s5 = inlined_call_operand.hbm [shape: bf16[128,1024], index: 5, kind: input, shape index: {}]   ;;  %s2116_s6 = inlined_call_operand.hbm [shape: f32[1,1024], index: 6, kind: input, shape index: {}]   ;;  %s2117_s7 = inlined_call_operand.hbm [shape: f32[2,1024], index: 7, kind: output, shape index: {}]  }
   0x1   :  { %2121 = sst [smem:[#allocation16_spill]] %s2111_s1 }
   0x2   :  { %2122 = sst [smem:[#allocation17_spill]] %s2115_s5 }
   0x3   :  { %12 = vsyncpa [#allocation4], 0 }
   0x4   :  { %14 = vsyncpa [#allocation4 + $0x1], 0 }
   0x5   :  { %15 = vsyncpa [#allocation7], 0 }
   0x6   :  { %16 = vsyncpa [#allocation10], 0 }
   0x7   :  { %17 = vsyncpa [#allocation5], 0  ;;  %s1931_s24 = smov 0   ;;  %s1933_s25 = smov 0  }
   0x8   :  { %s1935_s26 = smov 0   ;;  %s1937_s27 = smov 0  }
   0x9   :  { %s1939_s28 = smov 0   ;;  %s1941_s29 = smov 0  }
   0xa LB: > { %s2118_s30 = sadd.s32 4294967295, %s1878_s29   ;;  %p57_p0 = scmp.ne.s32.totalorder %s1862_s25, %s1858_s24  ;;  %s1878_s29 = sphi %s1941_s29, %s23_s29   ;;  %s1874_s28 = sphi %s1939_s28, %s2136_s28   ;;  %s1870_s27 = sphi %s1937_s27, %s2135_s27   ;;  %s1866_s26 = sphi %s1935_s26, %s2134_s26   ;;  %s1862_s25 = sphi %s1933_s25, %s2133_s25   ;;  %s1858_s24 = sphi %s1931_s24, %s2132_s24  }
   0xb   : > { %p1963_p1 = scmp.eq.s32.totalorder %s2118_s30, 0  ;;  %p1174_p2 = scmp.ge.s32.totalorder %s1878_s29, 1 }
   0xc   : > { %p220_p3 = scmp.lt.s32.totalorder %s1878_s29, 3  ;;  %s2125_s1 = sld [smem:[#allocation16_spill]] }
   0xd   : > { %p1971_p4 = por %p1963_p1, %p57_p0  ;;  %s1880_s14 = smov [#allocation6]  }
   0xe   : > { %p1978_p5 = pnand %p1174_p2, %p220_p3  ;;  %s233_s15 = sshll.u32 %s1880_s14, 4  ;;  %s234_s15 = int_to_ptr.vmem [resolvable:$true] %s233_s15 }
   0xf   : > { %s2128_s5 = sld [smem:[#allocation17_spill]]  ;;  %s2119_s20 = smov 64  }
  0x10   : > { %p1575_p6 = pneg %p1978_p5  ;;  %s2120_s21 = smov 4  }
  0x11   : > { %s1883_s22 = smov [#allocation8]   ;;  %s1884_s24 = smov 512  }
  0x12   : > { %s231_s12 = sshll.u32 %s2125_s1, 4  ;;  %p1986_p7 = pnand %p1575_p6, %p1963_p1  ;;  %s232_s12 = int_to_ptr.hbm [resolvable:$true] %s231_s12 }
  0x13   : > { %s256_s23 = sshll.u32 %s1883_s22, 4  ;;  %s1885_s10 = smov 32   ;;  %s257_s23 = int_to_ptr.vmem [resolvable:$true] %s256_s23 }
  0x14   : > { %1578 = dma.hbm_to_vmem [thread:$0]  (!%p1986_p7), %s232_s12, 1024, %s234_s15, [#allocation7], %s2119_s20, %s2119_s20, %s2120_s21  }
  0x15   : > { %s254_s19 = sshll.u32 %s2128_s5, 4  ;;  %s269_s17 = sshll.u32 %s2116_s6, 4  ;;  %s255_s19 = int_to_ptr.hbm [resolvable:$true] %s254_s19  ;;  %s270_s17 = int_to_ptr.hbm [resolvable:$true] %s269_s17 }
  0x16   : > { %1581 = dma.hbm_to_vmem [thread:$0]  (!%p1986_p7), %s255_s19, 8192, %s257_s23, [#allocation7], %s1884_s24, %s1884_s24, %s1885_s10  }
  0x17   : > { %s1886_s18 = smov [#allocation9]   ;;  %s44_s12 = sadd.s32 1, %s1866_s26 }
  0x18   : > { %s271_s30 = sshll.u32 %s1886_s18, 4  ;;  %s32_s15 = sadd.s32 1, %s1874_s28  ;;  %s272_s30 = int_to_ptr.vmem [resolvable:$true] %s271_s30 }
  0x19   : > { %1584 = dma.hbm_to_vmem [thread:$0]  (!%p1986_p7), %s270_s17, 128, %s272_s30, [#allocation10]  }
  0x1a   : > { %p51_p8 = scmp.ne.s32.totalorder %s1866_s26, %s1862_s25  ;;  %p33_p9 = scmp.ge.s32.totalorder %s32_s15, 2 }
  0x1b   : > { %p52_p10 = scmp.eq.s32.totalorder %s1878_s29, 0  ;;  %p1592_p11 = scmp.lt.s32.totalorder %s1878_s29, 2 }
  0x1c   : > { %s282_s19 = sand.u32 1, %s1866_s26   ;;  %s2138_s15 = smov (%p33_p9, %s32_s15), 0 }
  0x1d   : > { %p53_p12 = por %p52_p10, %p51_p8  ;;  %s40_s22 = ssub.s32 %s1874_s28, %s2138_s15 }
  0x1e   : > { %s1179_s23 = sshll.u32 %s282_s19, 3  ;;  %p42_p13 = scmp.eq.s32.totalorder %s40_s22, 0 }
  0x1f   : > { %s1180_s24 = sshll.u32 %s1874_s28, 2  ;;  %s286_s10 = scalar_lea.vmem [#allocation3], %s1179_s23 }
  0x20   : > { %s296_s16 = sshll.u32 %s286_s10, 4  ;;  %s293_s17 = scalar_lea.hbm %s2110_s0, %s1180_s24  ;;  %s297_s16 = int_to_ptr.vmem [resolvable:$true] %s296_s16 }
  0x21   : > { %s2018_s30 = scalar_select %p42_p13, %s1866_s26, %s44_s12  }
  0x22   : > { %s294_s18 = sshll.u32 %s293_s17, 4  ;;  %p1586_p0 = pnand %p1592_p11, %p53_p12  ;;  %s295_s18 = int_to_ptr.hbm [resolvable:$true] %s294_s18 }
  0x23   : > { %s283_s20 = scalar_lea.sflag [#allocation4], %s282_s19  ;;  %s1887_s21 = smov 128  }
  0x24   : > { %s2129_s1 = smov 4   ;;  %s2130_s5 = smov 64  }
  0x25   : > { %1588 = dma.hbm_to_vmem [thread:$0]  (!%p1586_p0), %s295_s18, 128, %s297_s16, %s283_s20, %s1887_s21, %s2130_s5, %s2129_s1  }
  0x26   : > { %308 = sbr.rel (%p1978_p5) target bundleno = 706 (0x2c2), region = 48  ;;  %s310_s12 = sand.u32 (!%p1978_p5), 1, %s1862_s25  }
  0x27   : > { %s2030_s22 = sshll.u32 (!%p1978_p5), %s310_s12, 3  ;;  %s311_s23 = scalar_lea.sflag (!%p1978_p5), [#allocation4], %s310_s12 }
  0x28   : > { %s314_s24 = scalar_lea.vmem (!%p1978_p5), [#allocation3], %s2030_s22 }
  0x2b   : > { %1841 = dma.done.wait (%p1971_p4), %s311_s23, 128  }
  0x2c   : > { %1843 = vsyncadd (%p1971_p4), %s311_s23, 4294967168 }
  0x2d   : > { %1845 = dma.done.wait (%p1963_p1), [#allocation7], 9216  }
  0x2e   : > { %1847 = vsyncadd (%p1963_p1), [#allocation7], 4294958080 }
  0x2f   : > { %1849 = dma.done.wait (%p1963_p1), [#allocation10], 128  }
  0x30   : > { %1851 = vsyncadd (%p1963_p1), [#allocation10], 4294967168  ;;  %p1186_p2 = scmp.ne.s32.totalorder %s1870_s27, 0 }
  0x32   : > { %360 = sbr.rel (%p1186_p2) target bundleno = 57 (0x39), region = 68 }
  0x37   : > { %v1888_v0 = vmov 0.0  }
  0x38   : > { %361 = vst [vmem:[#allocation2] sm:$0x3] %v1888_v0 }
  0x39 PF: > { %v1492_v1 = vld [vmem:[#allocation6 + $0x38] sm:$0xff]  ;;  %v1491_v2 = vld [vmem:[#allocation6 + $0x30] sm:$0xff]  ;;  %v1490_v3 = vld [vmem:[#allocation6 + $0x28] sm:$0xff]  ;;  %vm485_vm0 = vcmask 1041409   ;;  %p1223_p1 = scmp.ne.s32.totalorder %s1870_s27, 1 }
  0x3a   : > { %438 = vmatpush.bf16.msra.mxu0 %v1492_v1  ;;  %v1489_v4 = vld [vmem:[#allocation6 + $0x20] sm:$0xff]  ;;  %v1488_v5 = vld [vmem:[#allocation6 + $0x18] sm:$0xff]  ;;  %v1487_v6 = vld [vmem:[#allocation6 + $0x10] sm:$0xff] }
  0x3b   : > { %v1486_v7 = vld [vmem:[#allocation6 + $0x8] sm:$0xff]  ;;  %v1485_v8 = vld [vmem:[#allocation6] sm:$0xff]  ;;  %v1484_v9 = vld [vmem:[%s314_s24] sm:$0xff] }
  0x3c   : > { %v1657_v10 = vld [vmem:[%s2112_s2] ss:$0 sm:$0xff] }
  0x3e   : > { %439 = vmatpush.bf16.msra.mxu0 %v1491_v2 }
  0x3f   : > { %v470_v44 = vld [vmem:[#allocation2] sm:$0x3] }
  0x42   : > { %440 = vmatpush.bf16.msra.mxu0 %v1490_v3 }
  0x46   : > { %441 = vmatpush.bf16.msra.mxu0 %v1489_v4 }
  0x4a   : > { %442 = vmatpush.bf16.msra.mxu0 %v1488_v5 }
  0x4e   : > { %443 = vmatpush.bf16.msra.mxu0 %v1487_v6 }
  0x52   : > { %444 = vmatpush.bf16.msra.mxu0 %v1486_v7 }
  0x56   : > { %445 = vmatpush.bf16.msra.mxu0 %v1485_v8 }
  0x59   : > { %446 = vmatmul.bf16.vlgmr.msra.gmra.mxu0 %v1484_v9 }
  0xd6   : > { %v447_v11 = vpop.f32.mrf.mxu0 }
  0xd7   : > { %v448_v12 = vadd.f32 %v1657_v10, %v447_v11 }
  0xd9   : > { %v452_v13 = vmul.f32 %v448_v12, %v448_v12 }
  0xdb   : > { %v454_v14 = vmul.f32 %v452_v13, %v448_v12 }
  0xdd   : > { %v456_v15 = vmul.f32 0.044715, %v454_v14 }
  0xde   : > { %v449_v16 = vpop.f32.mrf.mxu0 }
  0xdf   : > { %v458_v17 = vadd.f32 %v456_v15, %v448_v12  ;;  %v450_v18 = vadd.f32 %v1657_v10, %v449_v16 }
  0xe1   : > { %v460_v19 = vmul.f32 0.7978846, %v458_v17  ;;  %v453_v20 = vmul.f32 %v450_v18, %v450_v18 }
  0xe3   : > { %1658 = vtanh.f32 %v460_v19  ;;  %v455_v21 = vmul.f32 %v453_v20, %v450_v18 }
  0xe5   : > { %v457_v22 = vmul.f32 0.044715, %v455_v21 }
  0xe7   : > { %v459_v23 = vadd.f32 %v457_v22, %v450_v18 }
  0xe9   : > { %v1659_v24 = vpop.eup %1658  ;;  %v461_v25 = vmul.f32 0.7978846, %v459_v23 }
  0xea   : > { %v464_v26 = vadd.f32 1.0, %v1659_v24 }
  0xeb   : > { %1660 = vtanh.f32 %v461_v25 }
  0xec   : > { %v466_v27 = vmul.f32 0.5, %v464_v26 }
  0xee   : > { %v468_v28 = vmul.f32 %v466_v27, %v448_v12 }
  0xf0   : > { %v471_v29 = vrot.slane %v468_v28, 4 }
  0xf1   : > { %v1661_v30 = vpop.eup %1660 }
  0xf2   : > { %v472_v31 = vadd.f32 %v471_v29, %v468_v28  ;;  %v465_v32 = vadd.f32 1.0, %v1661_v30 }
  0xf4   : > { %v467_v33 = vmul.f32 0.5, %v465_v32  ;;  %v473_v34 = vrot.slane %v472_v31, 2 }
  0xf6   : > { %v469_v35 = vmul.f32 %v467_v33, %v450_v18  ;;  %v474_v37 = vadd.f32 %v473_v34, %v472_v31 }
  0xf8   : > { %v477_v36 = vrot.slane %v469_v35, 4  ;;  %v475_v40 = vrot.slane %v474_v37, 1 }
  0xfa   : > { %v478_v38 = vadd.f32 %v477_v36, %v469_v35  ;;  %v476_v43 = vadd.f32 %v475_v40, %v474_v37 }
  0xfc   : > { %v479_v39 = vrot.slane %v478_v38, 2 }
  0xfe   : > { %v480_v41 = vadd.f32 %v479_v39, %v478_v38 }
 0x100   : > { %v481_v42 = vrot.slane %v480_v41, 1 }
 0x102   : > { %v482_v45 = vadd.f32 %v481_v42, %v480_v41 }
 0x103   : > { %493 = sbr.rel (%p1223_p1) target bundleno = 700 (0x2bc), region = 72 }
 0x104   : > { %v486_v46 = vsel %vm485_vm0, %v482_v45, %v476_v43 }
 0x105   : > { %v488_v47 = vadd.f32 %v486_v46, %v470_v44 }
 0x107   : > { %489 = vst [vmem:[#allocation2] sm:$0x3] %v488_v47 }
 0x108   : > { %vm496_vm1 = vcmask 1041408   ;;  %v1889_v51 = vmov 128.0   ;;  %v1450_v54 = vld [vmem:[#allocation8 + $0x1c0] sm:$0xf]  ;;  %v1549_v56 = vld [vmem:[#allocation8 + $0x1c4] sm:$0xf] }
 0x109   : > { %1664 = vrcp.f32 %v1889_v51  ;;  %v1553_v55 = vld [vmem:[#allocation8 + $0x1dc] sm:$0xf0]  ;;  %v1452_v58 = vld [vmem:[#allocation8 + $0x1e0] sm:$0xf0]  ;;  %v1458_v59 = vld [vmem:[#allocation8 + $0x1c8] sm:$0xf] }
 0x10a   : > { %v1451_v57 = vor.u32 %v1553_v55, %v1450_v54  ;;  %v1554_v60 = vld [vmem:[#allocation8 + $0x1e4] sm:$0xf0]  ;;  %v1455_v61 = vor.u32 %v1549_v56, %v1452_v58  ;;  %v1550_v63 = vld [vmem:[#allocation8 + $0x1cc] sm:$0xf]  ;;  %v1418_v1 = vld [vmem:[#allocation8 + $0x180] sm:$0xf] }
 0x10b   : > { %v1459_v62 = vor.u32 %v1554_v60, %v1458_v59  ;;  %v1460_v0 = vld [vmem:[#allocation8 + $0x1e8] sm:$0xf0]  ;;  %v1545_v3 = vld [vmem:[#allocation8 + $0x19c] sm:$0xf0]  ;;  %v1541_v4 = vld [vmem:[#allocation8 + $0x184] sm:$0xf] }
 0x10c   : > { %939 = vmatpush.bf16.msra.mxu0 %v1451_v57  ;;  %v1463_v2 = vor.u32 %v1550_v63, %v1460_v0  ;;  %v1420_v5 = vld [vmem:[#allocation8 + $0x1a0] sm:$0xf0]  ;;  %952 = vmatpush.bf16.msra.mxu1 %v1455_v61  ;;  %v1419_v6 = vor.u32 %v1545_v3, %v1418_v1  ;;  %v1426_v8 = vld [vmem:[#allocation8 + $0x188] sm:$0xf]  ;;  %v1542_v10 = vld [vmem:[#allocation8 + $0x18c] sm:$0xf] }
 0x10d   : > { %965 = vmatpush.bf16.msra.mxu2 %v1459_v62  ;;  %v1423_v7 = vor.u32 %v1541_v4, %v1420_v5  ;;  %v1546_v9 = vld [vmem:[#allocation8 + $0x1a4] sm:$0xf0]  ;;  %v1428_v12 = vld [vmem:[#allocation8 + $0x1a8] sm:$0xf0]  ;;  %v1386_v13 = vld [vmem:[#allocation8 + $0x140] sm:$0xf] }
 0x10e   : > { %v494_v48 = vld [vmem:[#allocation2] sm:$0x3]  ;;  %978 = vmatpush.bf16.msra.mxu3 %v1463_v2  ;;  %v1427_v11 = vor.u32 %v1546_v9, %v1426_v8  ;;  %v1537_v14 = vld [vmem:[#allocation8 + $0x15c] sm:$0xf0]  ;;  %v1431_v15 = vor.u32 %v1542_v10, %v1428_v12  ;;  %v1533_v16 = vld [vmem:[#allocation8 + $0x144] sm:$0xf] }
 0x10f   : > { %v2050_v49 = vmul.f32 0.0625, %v494_v48  ;;  %v2054_v52 = vpop.eup %1664  ;;  %v1388_v17 = vld [vmem:[#allocation8 + $0x160] sm:$0xf0]  ;;  %v1394_v18 = vld [vmem:[#allocation8 + $0x148] sm:$0xf]  ;;  %v1387_v19 = vor.u32 %v1537_v14, %v1386_v13  ;;  %vm1058_vm6 = vcmask 1045508  }
 0x110   : > { %v2057_v53 = vmul.f32 128.0, %v2054_v52  ;;  %940 = vmatpush.bf16.msra.mxu0 %v1419_v6  ;;  %v1538_v20 = vld [vmem:[#allocation8 + $0x164] sm:$0xf0]  ;;  %v1534_v21 = vld [vmem:[#allocation8 + $0x14c] sm:$0xf]  ;;  %953 = vmatpush.bf16.msra.mxu1 %v1423_v7  ;;  %v1391_v23 = vor.u32 %v1533_v16, %v1388_v17  ;;  %vm505_vm2 = vweird.f32 %v2054_v52  ;;  %vm1060_vm7 = vcmask 1043456  }
 0x111   : > { %v497_v50 = vsel %vm496_vm1, %v2050_v49, 0.0  ;;  %v1396_v22 = vld [vmem:[#allocation8 + $0x168] sm:$0xf0]  ;;  %966 = vmatpush.bf16.msra.mxu2 %v1427_v11  ;;  %v1395_v24 = vor.u32 %v1538_v20, %v1394_v18  ;;  %v1354_v25 = vld [vmem:[#allocation8 + $0x100] sm:$0xf] }
 0x112   : > { %498 = vadd.xlane.f32.xlu0 %v497_v50  ;;  %v1529_v26 = vld [vmem:[#allocation8 + $0x11c] sm:$0xf0]  ;;  %v1525_v27 = vld [vmem:[#allocation8 + $0x104] sm:$0xf]  ;;  %979 = vmatpush.bf16.msra.mxu3 %v1431_v15  ;;  %v1399_v28 = vor.u32 %v1534_v21, %v1396_v22  ;;  %v1362_v30 = vld [vmem:[#allocation8 + $0x108] sm:$0xf] }
 0x113   : > { %v1356_v29 = vld [vmem:[#allocation8 + $0x120] sm:$0xf0]  ;;  %v1530_v31 = vld [vmem:[#allocation8 + $0x124] sm:$0xf0]  ;;  %v502_v32 = vsub.f32 1.0, %v2057_v53  ;;  %v1355_v35 = vor.u32 %v1529_v26, %v1354_v25 }
 0x114   : > { %v1526_v33 = vld [vmem:[#allocation8 + $0x10c] sm:$0xf]  ;;  %941 = vmatpush.bf16.msra.mxu0 %v1387_v19  ;;  %954 = vmatpush.bf16.msra.mxu1 %v1391_v23  ;;  %v1359_v36 = vor.u32 %v1525_v27, %v1356_v29  ;;  %v1363_v37 = vor.u32 %v1530_v31, %v1362_v30  ;;  %v1322_v47 = vld [vmem:[#allocation8 + $0xc0] sm:$0xf]  ;;  %v1517_v50 = vld [vmem:[#allocation8 + $0xc4] sm:$0xf] }
 0x115   : > { %v1364_v34 = vld [vmem:[#allocation8 + $0x128] sm:$0xf0]  ;;  %967 = vmatpush.bf16.msra.mxu2 %v1395_v24  ;;  %v503_v39 = vmul.f32 %v2054_v52, %v502_v32  ;;  %v1521_v48 = vld [vmem:[#allocation8 + $0xdc] sm:$0xf0]  ;;  %v1324_v53 = vld [vmem:[#allocation8 + $0xe0] sm:$0xf0] }
 0x116   : > { %980 = vmatpush.bf16.msra.mxu3 %v1399_v28  ;;  %v1367_v38 = vor.u32 %v1526_v33, %v1364_v34  ;;  %v1323_v51 = vor.u32 %v1521_v48, %v1322_v47  ;;  %v1330_v54 = vld [vmem:[#allocation8 + $0xc8] sm:$0xf]  ;;  %v1327_v55 = vor.u32 %v1517_v50, %v1324_v53  ;;  %v1518_v57 = vld [vmem:[#allocation8 + $0xcc] sm:$0xf]  ;;  %v1290_v59 = vld [vmem:[#allocation8 + $0x80] sm:$0xf] }
 0x117   : > { %v504_v40 = vadd.f32 %v2054_v52, %v503_v39  ;;  %v1332_v58 = vld [vmem:[#allocation8 + $0xe8] sm:$0xf0]  ;;  %v1513_v60 = vld [vmem:[#allocation8 + $0x9c] sm:$0xf0]  ;;  %v1509_v61 = vld [vmem:[#allocation8 + $0x84] sm:$0xf] }
 0x118   : > { %942 = vmatpush.bf16.msra.mxu0 %v1355_v35  ;;  %955 = vmatpush.bf16.msra.mxu1 %v1359_v36  ;;  %v1291_v62 = vor.u32 %v1513_v60, %v1290_v59  ;;  %v1292_v63 = vld [vmem:[#allocation8 + $0xa0] sm:$0xf0]  ;;  %v1298_v0 = vld [vmem:[#allocation8 + $0x88] sm:$0xf]  ;;  %v1510_v4 = vld [vmem:[#allocation8 + $0x8c] sm:$0xf] }
 0x119   : > { %968 = vmatpush.bf16.msra.mxu2 %v1363_v37  ;;  %v2064_v41 = vsel %vm505_vm2, %v2054_v52, %v504_v40  ;;  %v1522_v52 = vld [vmem:[#allocation8 + $0xe4] sm:$0xf0]  ;;  %v1295_v2 = vor.u32 %v1509_v61, %v1292_v63  ;;  %v1300_v5 = vld [vmem:[#allocation8 + $0xa8] sm:$0xf0]  ;;  %v1258_v7 = vld [vmem:[#allocation8 + $0x40] sm:$0xf] }
 0x11a   : > { %981 = vmatpush.bf16.msra.mxu3 %v1367_v38  ;;  %v1331_v56 = vor.u32 %v1522_v52, %v1330_v54  ;;  %v1514_v1 = vld [vmem:[#allocation8 + $0xa4] sm:$0xf0]  ;;  %v1303_v6 = vor.u32 %v1510_v4, %v1300_v5  ;;  %v1505_v8 = vld [vmem:[#allocation8 + $0x5c] sm:$0xf0]  ;;  %v1501_v9 = vld [vmem:[#allocation8 + $0x44] sm:$0xf] }
 0x11b   : > { %v1299_v3 = vor.u32 %v1514_v1, %v1298_v0  ;;  %v1259_v10 = vor.u32 %v1505_v8, %v1258_v7  ;;  %v1260_v11 = vld [vmem:[#allocation8 + $0x60] sm:$0xf0]  ;;  %v1266_v12 = vld [vmem:[#allocation8 + $0x48] sm:$0xf]  ;;  %v1502_v16 = vld [vmem:[#allocation8 + $0x4c] sm:$0xf] }
 0x11c   : > { %943 = vmatpush.bf16.msra.mxu0 %v1323_v51  ;;  %956 = vmatpush.bf16.msra.mxu1 %v1327_v55  ;;  %v1506_v13 = vld [vmem:[#allocation8 + $0x64] sm:$0xf0]  ;;  %v1263_v14 = vor.u32 %v1501_v9, %v1260_v11  ;;  %v1268_v17 = vld [vmem:[#allocation8 + $0x68] sm:$0xf0]  ;;  %v1226_v19 = vld [vmem:[#allocation8] sm:$0xf] }
 0x11d   : > { %969 = vmatpush.bf16.msra.mxu2 %v1331_v56  ;;  %v1267_v15 = vor.u32 %v1506_v13, %v1266_v12  ;;  %v1271_v18 = vor.u32 %v1502_v16, %v1268_v17  ;;  %v1497_v20 = vld [vmem:[#allocation8 + $0x1c] sm:$0xf0]  ;;  %v1493_v21 = vld [vmem:[#allocation8 + $0x4] sm:$0xf]  ;;  %v1234_v24 = vld [vmem:[#allocation8 + $0x8] sm:$0xf] }
 0x11e   : > { %v1227_v22 = vor.u32 %v1497_v20, %v1226_v19  ;;  %v1228_v23 = vld [vmem:[#allocation8 + $0x20] sm:$0xf0]  ;;  %v1498_v25 = vld [vmem:[#allocation8 + $0x24] sm:$0xf0]  ;;  %v1494_v28 = vld [vmem:[#allocation8 + $0xc] sm:$0xf] }
 0x11f   : > { %v1231_v26 = vor.u32 %v1493_v21, %v1228_v23  ;;  %v1235_v27 = vor.u32 %v1498_v25, %v1234_v24  ;;  %v1236_v29 = vld [vmem:[#allocation8 + $0x28] sm:$0xf0]  ;;  %v1466_v30 = vld [vmem:[#allocation8 + $0x1d0] sm:$0xf]  ;;  %v1551_v33 = vld [vmem:[#allocation8 + $0x1d4] sm:$0xf] }
 0x120   : > { %944 = vmatpush.bf16.msra.mxu0 %v1291_v62  ;;  %957 = vmatpush.bf16.msra.mxu1 %v1295_v2  ;;  %v1239_v31 = vor.u32 %v1494_v28, %v1236_v29  ;;  %v1555_v32 = vld [vmem:[#allocation8 + $0x1ec] sm:$0xf0]  ;;  %v1468_v34 = vld [vmem:[#allocation8 + $0x1f0] sm:$0xf0]  ;;  %v1474_v37 = vld [vmem:[#allocation8 + $0x1d8] sm:$0xf] }
 0x121   : > { %970 = vmatpush.bf16.msra.mxu2 %v1299_v3  ;;  %v1467_v35 = vor.u32 %v1555_v32, %v1466_v30  ;;  %v1471_v36 = vor.u32 %v1551_v33, %v1468_v34  ;;  %v1556_v38 = vld [vmem:[#allocation8 + $0x1f4] sm:$0xf0]  ;;  %v1552_v39 = vld [vmem:[#allocation8 + $0x1dc] sm:$0xf]  ;;  %v1543_v48 = vld [vmem:[#allocation8 + $0x194] sm:$0xf] }
 0x122   : > { %v1475_v40 = vor.u32 %v1556_v38, %v1474_v37  ;;  %v1436_v50 = vld [vmem:[#allocation8 + $0x1b0] sm:$0xf0]  ;;  %v1442_v51 = vld [vmem:[#allocation8 + $0x198] sm:$0xf]  ;;  %v1544_v52 = vld [vmem:[#allocation8 + $0x19c] sm:$0xf] }
 0x123   : > { %v1439_v53 = vor.u32 %v1543_v48, %v1436_v50  ;;  %v1548_v54 = vld [vmem:[#allocation8 + $0x1b4] sm:$0xf0]  ;;  %v1444_v55 = vld [vmem:[#allocation8 + $0x1b8] sm:$0xf0]  ;;  %v1535_v59 = vld [vmem:[#allocation8 + $0x154] sm:$0xf] }
 0x124   : > { %945 = vmatpush.bf16.msra.mxu0 %v1259_v10  ;;  %958 = vmatpush.bf16.msra.mxu1 %v1263_v14  ;;  %v1443_v56 = vor.u32 %v1548_v54, %v1442_v51  ;;  %v1404_v61 = vld [vmem:[#allocation8 + $0x170] sm:$0xf0]  ;;  %v1410_v62 = vld [vmem:[#allocation8 + $0x158] sm:$0xf]  ;;  %v1536_v2 = vld [vmem:[#allocation8 + $0x15c] sm:$0xf] }
 0x125   : > { %971 = vmatpush.bf16.msra.mxu2 %v1267_v15  ;;  %v1540_v63 = vld [vmem:[#allocation8 + $0x174] sm:$0xf0]  ;;  %v1407_v0 = vor.u32 %v1535_v59, %v1404_v61  ;;  %v1412_v3 = vld [vmem:[#allocation8 + $0x178] sm:$0xf0]  ;;  %v1370_v5 = vld [vmem:[#allocation8 + $0x110] sm:$0xf] }
 0x126   : > { %v1411_v1 = vor.u32 %v1540_v63, %v1410_v62  ;;  %v1415_v4 = vor.u32 %v1536_v2, %v1412_v3  ;;  %v1527_v7 = vld [vmem:[#allocation8 + $0x114] sm:$0xf]  ;;  %v1378_v10 = vld [vmem:[#allocation8 + $0x118] sm:$0xf]  ;;  %v1528_v14 = vld [vmem:[#allocation8 + $0x11c] sm:$0xf] }
 0x127   : > { %v1372_v9 = vld [vmem:[#allocation8 + $0x130] sm:$0xf0]  ;;  %v1532_v11 = vld [vmem:[#allocation8 + $0x134] sm:$0xf0]  ;;  %v1380_v15 = vld [vmem:[#allocation8 + $0x138] sm:$0xf0] }
 0x128   : > { %946 = vmatpush.bf16.msra.mxu0 %v1227_v22  ;;  %959 = vmatpush.bf16.msra.mxu1 %v1231_v26  ;;  %v1375_v12 = vor.u32 %v1527_v7, %v1372_v9  ;;  %v1379_v13 = vor.u32 %v1532_v11, %v1378_v10  ;;  %v1383_v16 = vor.u32 %v1528_v14, %v1380_v15  ;;  %v1338_v17 = vld [vmem:[#allocation8 + $0xd0] sm:$0xf]  ;;  %v1519_v19 = vld [vmem:[#allocation8 + $0xd4] sm:$0xf]  ;;  %v1346_v22 = vld [vmem:[#allocation8 + $0xd8] sm:$0xf] }
 0x129   : > { %972 = vmatpush.bf16.msra.mxu2 %v1235_v27  ;;  %v1340_v21 = vld [vmem:[#allocation8 + $0xf0] sm:$0xf0]  ;;  %v1524_v23 = vld [vmem:[#allocation8 + $0xf4] sm:$0xf0]  ;;  %v1520_v27 = vld [vmem:[#allocation8 + $0xdc] sm:$0xf] }
 0x12a   : > { %v1343_v25 = vor.u32 %v1519_v19, %v1340_v21  ;;  %v1347_v26 = vor.u32 %v1524_v23, %v1346_v22  ;;  %v1348_v28 = vld [vmem:[#allocation8 + $0xf8] sm:$0xf0]  ;;  %v1306_v29 = vld [vmem:[#allocation8 + $0x90] sm:$0xf]  ;;  %v1511_v33 = vld [vmem:[#allocation8 + $0x94] sm:$0xf] }
 0x12b   : > { %v1515_v32 = vld [vmem:[#allocation8 + $0xac] sm:$0xf0]  ;;  %v1308_v34 = vld [vmem:[#allocation8 + $0xb0] sm:$0xf0]  ;;  %v1314_v37 = vld [vmem:[#allocation8 + $0x98] sm:$0xf] }
 0x12c   : > { %991 = vmatpush.bf16.msrb.mxu0 %v1467_v35  ;;  %1004 = vmatpush.bf16.msrb.mxu1 %v1471_v36  ;;  %v1307_v35 = vor.u32 %v1515_v32, %v1306_v29  ;;  %v1311_v36 = vor.u32 %v1511_v33, %v1308_v34  ;;  %v1516_v38 = vld [vmem:[#allocation8 + $0xb4] sm:$0xf0]  ;;  %v1276_v48 = vld [vmem:[#allocation8 + $0x70] sm:$0xf0]  ;;  %v1496_v63 = vld [vmem:[#allocation8 + $0x1c] sm:$0xf] }
 0x12d   : > { %1017 = vmatpush.bf16.msrb.mxu2 %v1475_v40  ;;  %v1282_v50 = vld [vmem:[#allocation8 + $0x58] sm:$0xf]  ;;  %v1244_v59 = vld [vmem:[#allocation8 + $0x30] sm:$0xf0]  ;;  %v1662_v11 = vld [vmem:[%s2113_s3] ss:$0 sm:$0xff] }
 0x12e   : > { %v1508_v51 = vld [vmem:[#allocation8 + $0x74] sm:$0xf0] }
 0x12f   : > { %v1250_v61 = vld [vmem:[#allocation8 + $0x18] sm:$0xf] }
 0x130   : > { %1005 = vmatpush.bf16.msrb.mxu1 %v1439_v53  ;;  %v1504_v53 = vld [vmem:[#allocation8 + $0x5c] sm:$0xf]  ;;  %v1500_v62 = vld [vmem:[#allocation8 + $0x34] sm:$0xf0] }
 0x131   : > { %1018 = vmatpush.bf16.msrb.mxu2 %v1443_v56  ;;  %v1242_v56 = vld [vmem:[#allocation8 + $0x10] sm:$0xf] }
 0x134   : > { %1006 = vmatpush.bf16.msrb.mxu1 %v1407_v0  ;;  %v1252_v0 = vld [vmem:[#allocation8 + $0x38] sm:$0xf0] }
 0x135   : > { %1019 = vmatpush.bf16.msrb.mxu2 %v1411_v1 }
 0x138   : > { %1007 = vmatpush.bf16.msrb.mxu1 %v1375_v12 }
 0x139   : > { %1020 = vmatpush.bf16.msrb.mxu2 %v1379_v13  ;;  %v1663_v13 = vld [vmem:[%s2114_s4] ss:$0 sm:$0xff] }
 0x13c   : > { %1008 = vmatpush.bf16.msrb.mxu1 %v1343_v25 }
 0x13d   : > { %1021 = vmatpush.bf16.msrb.mxu2 %v1347_v26 }
 0x140   : > { %1009 = vmatpush.bf16.msrb.mxu1 %v1311_v36 }
 0x185   : > { %v499_v42 = vpop.xlane.xlu0 %498 }
 0x186   : > { %v507_v43 = vmul.f32 %v2064_v41, %v499_v42  ;;  %v1476_v42 = vld [vmem:[#allocation8 + $0x1f8] sm:$0xf0] }
 0x188   : > { %v2068_v44 = vsub.f32 %v2050_v49, %v507_v43  ;;  %v1335_v49 = vor.u32 %v1518_v57, %v1332_v58  ;;  %v1434_v43 = vld [vmem:[#allocation8 + $0x190] sm:$0xf]  ;;  %v1447_v57 = vor.u32 %v1544_v52, %v1444_v55  ;;  %v1284_v55 = vld [vmem:[#allocation8 + $0x78] sm:$0xf0] }
 0x189   : > { %v1402_v58 = vld [vmem:[#allocation8 + $0x150] sm:$0xf] }
 0x18a   : > { %v509_v45 = vmul.f32 %v2068_v44, %v2068_v44  ;;  %982 = vmatpush.bf16.msra.mxu3 %v1335_v49  ;;  %v1539_v49 = vld [vmem:[#allocation8 + $0x16c] sm:$0xf0] }
 0x18b   : > { %v1403_v60 = vor.u32 %v1539_v49, %v1402_v58  ;;  %v1499_v58 = vld [vmem:[#allocation8 + $0x2c] sm:$0xf0]  ;;  %v1495_v49 = vld [vmem:[#allocation8 + $0x14] sm:$0xf] }
 0x18c   : > { %v510_v46 = vsel %vm496_vm1, %v509_v45, 0.0  ;;  %v1547_v45 = vld [vmem:[#allocation8 + $0x1ac] sm:$0xf0]  ;;  %v1243_v1 = vor.u32 %v1499_v58, %v1242_v56  ;;  %v1247_v2 = vor.u32 %v1495_v49, %v1244_v59 }
 0x18d   : > { %511 = vadd.xlane.f32.xlu0 %v510_v46  ;;  %v1479_v46 = vor.u32 %v1552_v39, %v1476_v42  ;;  %v1435_v47 = vor.u32 %v1547_v45, %v1434_v43  ;;  %v1512_v39 = vld [vmem:[#allocation8 + $0x9c] sm:$0xf]  ;;  %v1315_v42 = vor.u32 %v1516_v38, %v1314_v37  ;;  %v1274_v45 = vld [vmem:[#allocation8 + $0x50] sm:$0xf] }
 0x18e   : > { %983 = vmatpush.bf16.msra.mxu3 %v1303_v6  ;;  %v1531_v6 = vld [vmem:[#allocation8 + $0x12c] sm:$0xf0]  ;;  %v1316_v43 = vld [vmem:[#allocation8 + $0xb8] sm:$0xf0] }
 0x18f   : > { %992 = vmatpush.bf16.msrb.mxu0 %v1435_v47  ;;  %v1371_v8 = vor.u32 %v1531_v6, %v1370_v5  ;;  %v1507_v47 = vld [vmem:[#allocation8 + $0x6c] sm:$0xf0]  ;;  %1022 = vmatpush.bf16.msrb.mxu2 %v1315_v42  ;;  %v1255_v6 = vor.u32 %v1496_v63, %v1252_v0 }
 0x190   : > { %v1275_v54 = vor.u32 %v1507_v47, %v1274_v45 }
 0x192   : > { %984 = vmatpush.bf16.msra.mxu3 %v1271_v18  ;;  %v1523_v18 = vld [vmem:[#allocation8 + $0xec] sm:$0xf0] }
 0x193   : > { %993 = vmatpush.bf16.msrb.mxu0 %v1403_v60  ;;  %v1339_v20 = vor.u32 %v1523_v18, %v1338_v17  ;;  %v1287_v60 = vor.u32 %v1504_v53, %v1284_v55  ;;  %v601_v18 = vld [vmem:[#allocation9] sm:$0xff] }
 0x194   : > { %v605_v23 = vperm.slane %v601_v18, 2  ;;  %v603_v25 = vperm.slane %v601_v18, 0  ;;  %v608_v42 = vperm.slane %v601_v18, 5  ;;  %v610_v47 = vperm.slane %v601_v18, 7 }
 0x196   : > { %985 = vmatpush.bf16.msra.mxu3 %v1239_v31  ;;  %v1351_v31 = vor.u32 %v1520_v27, %v1348_v28 }
 0x197   : > { %994 = vmatpush.bf16.msrb.mxu0 %v1371_v8 }
 0x19a   : > { %1030 = vmatpush.bf16.msrb.mxu3 %v1479_v46  ;;  %v1319_v46 = vor.u32 %v1512_v39, %v1316_v43 }
 0x19b   : > { %995 = vmatpush.bf16.msrb.mxu0 %v1339_v20  ;;  %v604_v20 = vperm.slane %v601_v18, 1 }
 0x19e   : > { %1031 = vmatpush.bf16.msrb.mxu3 %v1447_v57  ;;  %v1283_v57 = vor.u32 %v1508_v51, %v1282_v50 }
 0x19f   : > { %996 = vmatpush.bf16.msrb.mxu0 %v1307_v35 }
 0x1a0   : > { %1023 = vmatpush.bf16.msrb.mxu2 %v1283_v57 }
 0x1a2   : > { %1032 = vmatpush.bf16.msrb.mxu3 %v1415_v4  ;;  %v1251_v4 = vor.u32 %v1500_v62, %v1250_v61 }
 0x1a3   : > { %997 = vmatpush.bf16.msrb.mxu0 %v1275_v54 }
 0x1a4   : > { %1024 = vmatpush.bf16.msrb.mxu2 %v1251_v4 }
 0x1a6   : > { %1033 = vmatpush.bf16.msrb.mxu3 %v1383_v16 }
 0x1a7   : > { %998 = vmatpush.bf16.msrb.mxu0 %v1243_v1 }
 0x1aa   : > { %1034 = vmatpush.bf16.msrb.mxu3 %v1351_v31 }
 0x1ae   : > { %1035 = vmatpush.bf16.msrb.mxu3 %v1319_v46  ;;  %v609_v46 = vperm.slane %v601_v18, 6 }
 0x1b2   : > { %1036 = vmatpush.bf16.msrb.mxu3 %v1287_v60 }
 0x1b6   : > { %1037 = vmatpush.bf16.msrb.mxu3 %v1255_v6 }
 0x200   : > { %v512_v24 = vpop.xlane.xlu0 %511 }
 0x201   : > { %v513_v30 = vmul.f32 %v512_v24, %v2064_v41  ;;  %v1503_v41 = vld [vmem:[#allocation8 + $0x54] sm:$0xf]  ;;  %v606_v24 = vperm.slane %v601_v18, 3 }
 0x202   : > { %v1279_v52 = vor.u32 %v1503_v41, %v1276_v48  ;;  %v607_v41 = vperm.slane %v601_v18, 4 }
 0x203   : > { %v514_v40 = vadd.f32 1e-05, %v513_v30 }
 0x204   : > { %1010 = vmatpush.bf16.msrb.mxu1 %v1279_v52 }
 0x205   : > { %1666 = vrsqrt.f32 %v514_v40  ;;  %vm521_vm4 = vweird.f32 %v514_v40 }
 0x208   : > { %1011 = vmatpush.bf16.msrb.mxu1 %v1247_v2 }
 0x20b   : > { %v1667_v3 = vpop.eup %1666 }
 0x20c   : > { %v516_v5 = vmul.f32 %v1667_v3, %v514_v40  ;;  %vm522_vm3 = vweird.f32 %v1667_v3 }
 0x20d   : > { %vm523_vm5 = vmor %vm521_vm4, %vm522_vm3 }
 0x20e   : > { %v517_v7 = vmul.f32 %v1667_v3, %v516_v5 }
 0x210   : > { %v518_v8 = vmul.f32 0.5, %v517_v7 }
 0x212   : > { %v519_v9 = vsub.f32 1.5, %v518_v8 }
 0x214   : > { %v520_v10 = vmul.f32 %v1667_v3, %v519_v9 }
 0x216   : > { %v524_v12 = vsel %vm523_vm5, %v1667_v3, %v520_v10 }
 0x217   : > { %v525_v14 = vmul.f32 %v524_v12, %v2068_v44 }
 0x219   : > { %v530_v15 = vmul.f32 %v1662_v11, %v525_v14 }
 0x21b   : > { %v535_v16 = vadd.f32 %v1663_v13, %v530_v15 }
 0x21d   : > { %v536_v17 = vpack.c.bf16 %v535_v16, %v535_v16 }
 0x21f   : > { %947 = vmatmul.bf16.vlgmr.msra.gmra.mxu0 %v536_v17  ;;  %960 = vmatmul.bf16.vlgmr.msra.gmra.mxu1 %v536_v17 }
 0x220   : > { %973 = vmatmul.bf16.vlgmr.msra.gmra.mxu2 %v536_v17  ;;  %986 = vmatmul.bf16.vlgmr.msra.gmra.mxu3 %v536_v17 }
 0x22f   : > { %999 = vmatmul.bf16.vlgmr.msrb.gmra.mxu0 %v536_v17  ;;  %1012 = vmatmul.bf16.vlgmr.msrb.gmra.mxu1 %v536_v17 }
 0x230   : > { %1025 = vmatmul.bf16.vlgmr.msrb.gmra.mxu2 %v536_v17  ;;  %1038 = vmatmul.bf16.vlgmr.msrb.gmra.mxu3 %v536_v17 }
 0x29c   : > { %v948_v19 = vpop.f32.mrf.mxu0  ;;  %v961_v21 = vpop.f32.mrf.mxu1 }
 0x29d   : > { %v962_v22 = vadd.f32 %v961_v21, %v604_v20  ;;  %v949_v32 = vadd.f32 %v948_v19, %v603_v25 }
 0x29f   : > { %v1051_v27 = vrot.slane %v962_v22, 6 }
 0x2a1   : > { %v1057_v35 = vsel %vm496_vm1, %v949_v32, %v1051_v27 }
 0x2a3   : > { %v974_v44 = vpop.f32.mrf.mxu2  ;;  %v987_v26 = vpop.f32.mrf.mxu3 }
 0x2a4   : > { %v975_v28 = vadd.f32 %v974_v44, %v605_v23  ;;  %v988_v29 = vadd.f32 %v987_v26, %v606_v24  ;;  %v950_v30 = vpop.f32.mrf.mxu0  ;;  %v963_v31 = vpop.f32.mrf.mxu1 }
 0x2a6   : > { %v1052_v33 = vrot.slane %v975_v28, 4  ;;  %v1053_v34 = vrot.slane %v988_v29, 2 }
 0x2a8   : > { %v1059_v36 = vsel %vm1058_vm6, %v1052_v33, %v1053_v34 }
 0x2a9   : > { %v1061_v37 = vsel %vm1060_vm7, %v1057_v35, %v1059_v36 }
 0x2aa   : > { %1067 = vst [vmem:[#allocation11] sm:$0xff] %v1061_v37 }
 0x2ab   : > { %v976_v38 = vpop.f32.mrf.mxu2  ;;  %v989_v39 = vpop.f32.mrf.mxu3 }
 0x2ac   : > { %v1000_v40 = vpop.f32.mrf.mxu0  ;;  %v1013_v43 = vpop.f32.mrf.mxu1 }
 0x2ad   : > { %v1014_v45 = vadd.f32 %v1013_v43, %v608_v42  ;;  %v1001_v56 = vadd.f32 %v1000_v40, %v607_v41 }
 0x2af   : > { %v1054_v51 = vrot.slane %v1014_v45, 6 }
 0x2b1   : > { %v1062_v49 = vsel %vm496_vm1, %v1001_v56, %v1054_v51 }
 0x2b3   : > { %v1026_v48 = vpop.f32.mrf.mxu2  ;;  %v1039_v50 = vpop.f32.mrf.mxu3 }
 0x2b4   : > { %v1027_v53 = vadd.f32 %v1026_v48, %v609_v46  ;;  %v1040_v54 = vadd.f32 %v1039_v50, %v610_v47  ;;  %v1002_v52 = vpop.f32.mrf.mxu0  ;;  %v1015_v55 = vpop.f32.mrf.mxu1 }
 0x2b6   : > { %v1055_v57 = vrot.slane %v1027_v53, 4  ;;  %v1056_v58 = vrot.slane %v1040_v54, 2 }
 0x2b8   : > { %v1063_v59 = vsel %vm1058_vm6, %v1055_v57, %v1056_v58 }
 0x2b9   : > { %v1064_v60 = vsel %vm1060_vm7, %v1062_v49, %v1063_v59 }
 0x2ba   : > { %1068 = vst [vmem:[#allocation11 + $0x8] sm:$0xff] %v1064_v60 }
 0x2bb   : > { %v1028_v61 = vpop.f32.mrf.mxu2  ;;  %v1041_v62 = vpop.f32.mrf.mxu3 }
 0x2bc PF: > { %s2131_s20 = sadd.s32 4294967295, %s1878_s29   ;;  %s1080_s10 = sshll.u32 %s2117_s7, 4  ;;  %s1081_s10 = int_to_ptr.hbm [resolvable:$true] %s1080_s10 }
 0x2bd   : > { %p1596_p3 = scmp.eq.s32.totalorder %s2131_s20, 1  ;;  %s1890_s16 = smov [#allocation11]  }
 0x2be   : > { %s1078_s11 = sshll.u32 %s1890_s16, 4  ;;  %s1079_s11 = int_to_ptr.vmem [resolvable:$true] %s1078_s11 }
 0x2bf   : > { %1572 = dma.vmem_to_hbm [thread:$0]  (%p1596_p3), %s1079_s11, 256, %s1081_s10, [#allocation5]  }
 0x2c0   : > { %1853 = dma.done.wait (%p1596_p3), [#allocation5], 256  }
 0x2c1   : > { %1855 = vsyncadd (%p1596_p3), [#allocation5], 4294967040 }
 0x2c2 PF: > { %s23_s29 = sadd.s32 1, %s1878_s29   ;;  %s2132_s24 = smov %s1862_s25 }
 0x2c3   : > { %p20_p4 = scmp.ge.s32.totalorder %s23_s29, 4   ;;  %s2133_s25 = smov %s1866_s26 }
 0x2c4   : > { %s2134_s26 = smov %s2018_s30  ;;  %s2135_s27 = smov %s1874_s28 }
 0x2c5   : > { %s2136_s28 = smov %s2138_s15  ;;  %22 = sbr.rel (!%p20_p4) target bundleno = 10 (0xa), region = 106 }
 0x2ca   :  { %1094 = vsyncpa [#allocation4], 1 }
 0x2cb   :  { %1096 = vsyncpa [#allocation4 + $0x1], 1 }
 0x2cc   :  { %1097 = vsyncpa [#allocation7], 1 }
 0x2cd   :  { %1098 = vsyncpa [#allocation10], 1 }
 0x2ce   :  { %1099 = vsyncpa [#allocation5], 1 }
 0x2cf   :  { %1101 = vsyncpa [#allocation5 + $0x1], 1 }

</bundles_post_ra>
